<compile_context>
chip_gen: v5e
topology: v5e:2x2
jax: 0.10.0
libtpu: 0.0.40
codegen_flags: <defaults>
</compile_context>

<pallas_src>
import numpy as np
import jax
import jax.numpy as jnp
from jax.experimental import pallas as pl
from jax.experimental.pallas import tpu as pltpu

LANE = 128           # full vreg lane width -> 100% lane utilization, unmasked vst
MAX_ROW_TILE = 2048  # 2048 x 128 f32 = 1 MiB per block (x2 buffers x in/out ~ 4 MiB VMEM)


def _round_up(v, m):
    return (v + m - 1) // m * m


def _ipow(x, e):
    """x**e for a static non-negative Python int e via square-and-multiply
    (pure VALU multiplies; no reliance on integer_pow lowering)."""
    assert e >= 0
    result = None
    base = x
    while e > 0:
        if e & 1:
            result = base if result is None else result * base
        e >>= 1
        if e:
            base = base * base
    return result if result is not None else jnp.ones_like(x)


class EnvelopePallas:
    """Pallas TPU implementation of DimeNet's Envelope.forward (elementwise)."""

    def __init__(self, exponent):
        self.p = exponent + 1
        p = self.p
        self.a = -(p + 1) * (p + 2) / 2.0
        self.b = p * (p + 2.0)
        self.c = -p * (p + 1) / 2.0

    # ------------------------- kernel -------------------------
    def _kernel(self, x_ref, o_ref):
        # Only Python scalars are captured (become literals).
        p, a, b, c = self.p, self.a, self.b, self.c
        x = x_ref[...].astype(jnp.float32)       # cast in-kernel (free on VALU)
        inv_x = 1.0 / x                          # exact division (matches reference)
        x_pow_pm1 = _ipow(x, p - 1)              # x^(p-1)
        poly = a + x * (b + c * x)               # Horner: a + b*x + c*x^2
        y = inv_x + x_pow_pm1 * poly             # 1/x + a*x^(p-1)+b*x^p+c*x^(p+1)
        o_ref[...] = y.astype(o_ref.dtype)

    # ------------------------- forward -------------------------
    def __call__(self, x):
        orig_shape = x.shape
        orig_dtype = x.dtype
        flat = jnp.ravel(x)
        n = int(flat.shape[0])
        if n == 0:
            return jnp.reshape(flat, orig_shape)

        # Pad only the small tail (<128 elems) so the flat array reshapes to
        # a lane-dense [rows, 128] view. Skip entirely when already aligned.
        pad = (-n) % LANE
        if pad:
            # Pad with 1.0 so 1/x stays finite; padded tail is sliced off below.
            flat = jnp.concatenate(
                [flat, jnp.ones((pad,), dtype=flat.dtype)], axis=0)
        total = n + pad
        rows = total // LANE
        x2d = flat.reshape(rows, LANE)

        # Row tile: big blocks (~1 MiB) for HBM-roofline efficiency, but keep
        # at least 2 grid steps so v7x's 2 TensorCores both get work.
        if rows <= 8:
            row_tile = rows                       # full dim (allowed for any size)
        else:
            half = _round_up(-(-rows // 2), 8)    # ~rows/2, multiple of 8
            row_tile = max(8, min(MAX_ROW_TILE, half))
        num_blocks = -(-rows // row_tile)         # cdiv: partial last block is masked

        out2d = pl.pallas_call(
            self._kernel,
            out_shape=jax.ShapeDtypeStruct((rows, LANE), orig_dtype),
            grid=(num_blocks,),
            in_specs=[pl.BlockSpec((row_tile, LANE), lambda i: (i, 0))],
            out_specs=pl.BlockSpec((row_tile, LANE), lambda i: (i, 0)),
            compiler_params=pltpu.CompilerParams(
                dimension_semantics=("parallel",)),
        )(x2d)

        out = out2d.reshape(-1)
        if pad:
            out = out[:n]
        return out.reshape(orig_shape)


# ---------------------------------------------------------------------------
# Pure-JAX reference (identical math to the PyTorch module) for verification.
# ---------------------------------------------------------------------------
def envelope_reference(x, exponent):
    p = exponent + 1
    a = -(p + 1) * (p + 2) / 2.0
    b = p * (p + 2.0)
    c = -p * (p + 1) / 2.0
    x = x.astype(jnp.float32)
    x_pow_p0 = x ** (p - 1)
    x_pow_p1 = x_pow_p0 * x
    x_pow_p2 = x_pow_p1 * x
    return (1.0 / x + a * x_pow_p0 + b * x_pow_p1 + c * x_pow_p2).astype(x.dtype)


if __name__ == "__main__":
    exponent = 5
    env = EnvelopePallas(exponent)
    key = jax.random.PRNGKey(0)

    # Test 1: 1-D "edge distance" vector, non-multiple of 128 (exercises the
    # tail padding and the partial last grid block, >= 2 grid steps).
    E = 5000
    k1, k2 = jax.random.split(key)
    x1 = jax.random.uniform(k1, (E,), jnp.float32, minval=0.05, maxval=0.999)
    out1 = jax.block_until_ready(env(x1))
    assert out1.shape == (E,) and out1.dtype == jnp.float32
    ref1 = jax.block_until_ready(envelope_reference(x1, exponent))
    # Near x -> 1 the envelope is a cancellation of O(10..50) terms, so f32
    # rounding-order differences give ~1e-5 absolute deltas; tolerance
    # reflects that (not a bug in either implementation).
    np.testing.assert_allclose(np.asarray(out1), np.asarray(ref1),
                               rtol=1e-4, atol=1e-4)

    # Test 2: small multi-dim tensor whose size is a multiple of 128
    # (exercises the no-pad / no-slice fast path).
    x2 = jax.random.uniform(k2, (2, 4, 16, 16), jnp.float32,
                            minval=0.05, maxval=0.999)
    out2 = jax.block_until_ready(env(x2))
    assert out2.shape == (2, 4, 16, 16) and out2.dtype == jnp.float32
    ref2 = jax.block_until_ready(envelope_reference(x2, exponent))
    np.testing.assert_allclose(np.asarray(out2), np.asarray(ref2),
                               rtol=1e-4, atol=1e-4)

    print("KERNEL_OK")
</pallas_src>

<mosaic_0001>
module attributes {stable_mosaic.version = 11 : i64} {
  func.func @_kernel(%arg0: i32, %arg1: memref<24x128xf32, #tpu.memory_space<vmem>>, %arg2: memref<24x128xf32, #tpu.memory_space<vmem>>) attributes {dimension_semantics = [#tpu.dimension_semantics<parallel>], iteration_bounds = array<i64: 2>, scalar_prefetch = 0 : i64, scratch_operands = 0 : i64, tpu.core_type = #tpu.core_type<tc>, window_params = [{transform_indices = @transform_0, window_bounds = array<i64: 24, 128>}, {transform_indices = @transform_1, window_bounds = array<i64: 24, 128>}]} {
    %c0 = arith.constant 0 : index
    %c0_0 = arith.constant 0 : index
    %0 = vector.load %arg1[%c0, %c0_0] : memref<24x128xf32, #tpu.memory_space<vmem>>, vector<24x128xf32>
    %cst = arith.constant 1.000000e+00 : f32
    %1 = vector.broadcast %cst : f32 to vector<24x128xf32>
    %2 = arith.divf %1, %0 : vector<24x128xf32>
    %3 = arith.mulf %0, %0 : vector<24x128xf32>
    %4 = arith.mulf %3, %3 : vector<24x128xf32>
    %5 = arith.mulf %0, %4 : vector<24x128xf32>
    %cst_1 = arith.constant -2.100000e+01 : f32
    %6 = vector.broadcast %cst_1 : f32 to vector<24x128xf32>
    %7 = arith.mulf %6, %0 : vector<24x128xf32>
    %cst_2 = arith.constant 4.800000e+01 : f32
    %8 = vector.broadcast %cst_2 : f32 to vector<24x128xf32>
    %9 = arith.addf %8, %7 : vector<24x128xf32>
    %10 = arith.mulf %0, %9 : vector<24x128xf32>
    %cst_3 = arith.constant -2.800000e+01 : f32
    %11 = vector.broadcast %cst_3 : f32 to vector<24x128xf32>
    %12 = arith.addf %11, %10 : vector<24x128xf32>
    %13 = arith.mulf %5, %12 : vector<24x128xf32>
    %14 = arith.addf %2, %13 : vector<24x128xf32>
    %c0_4 = arith.constant 0 : index
    %c0_5 = arith.constant 0 : index
    %15 = vector.load %arg2[%c0_4, %c0_5] : memref<24x128xf32, #tpu.memory_space<vmem>>, vector<24x128xf32>
    tpu.vector_store %arg2[%c0_4, %c0_5], %14 {strides = array<i32>} : memref<24x128xf32, #tpu.memory_space<vmem>>, vector<24x128xf32>,
    return
  }
  func.func @transform_0(%arg0: i32) -> (i32, i32) {
    %c0_i32 = arith.constant 0 : i32
    %c0_i32_0 = arith.constant 0 : i32
    return %arg0, %c0_i32 : i32, i32
  }
  func.func @transform_1(%arg0: i32) -> (i32, i32) {
    %c0_i32 = arith.constant 0 : i32
    %c0_i32_0 = arith.constant 0 : i32
    return %arg0, %c0_i32 : i32, i32
  }
}

</mosaic_0001>

<bundles_post_ra>
// kernel: tpu_custom_call.1
= control target key start
LH: loop header
LB: loop body
LE: loop exit
PB: predicated region body
PF: predicated region fallthrough
CT: control target
= control target key end

     0   :  { %6 = vsyncpa [#allocation3], 0  ;;  %s729_s0 = inlined_call_operand.hbm [shape: f32[40,128], index: 0, kind: input, shape index: {}]   ;;  %s730_s1 = inlined_call_operand.hbm [shape: f32[40,128], index: 1, kind: output, shape index: {}]  }
   0x1   :  { %8 = vsyncpa [#allocation3 + $0x1], 0 }
   0x2   :  { %9 = vsyncpa [#allocation4], 0 }
   0x3   :  { %11 = vsyncpa [#allocation4 + $0x1], 0  ;;  %s531_s6 = smov 0   ;;  %s533_s7 = smov 0  }
   0x4   :  { %s535_s8 = smov 0   ;;  %s537_s9 = smov 0  }
   0x5 LB: > { %s552_s10 = sadd.s32 4294967295, %s513_s9   ;;  %s328_s11 = sadd.s32 4294967294, %s513_s9   ;;  %s513_s9 = sphi %s537_s9, %s747_s9   ;;  %s509_s8 = sphi %s535_s8, %s746_s8   ;;  %s505_s7 = sphi %s533_s7, %s745_s7   ;;  %s501_s6 = sphi %s531_s6, %s744_s6  }
   0x6   : > { %s556_s12 = sadd.s32 1, %s513_s9   ;;  %s24_s13 = sadd.s32 1, %s509_s8 }
   0x7   : > { %s21_s14 = ssub.s32 %s513_s9, %s556_s12  ;;  %p31_p0 = scmp.ne.s32.totalorder %s509_s8, %s505_s7 }
   0x8   : > { %p22_p1 = scmp.eq.s32.totalorder %s21_s14, 0  ;;  %p32_p2 = scmp.eq.s32.totalorder %s513_s9, 0 }
   0x9   : > { %p37_p3 = scmp.ne.s32.totalorder %s505_s7, %s501_s6  ;;  %p38_p4 = scmp.eq.s32.totalorder %s552_s10, 0 }
   0xa   : > { %s568_s15 = scalar_select %p22_p1, %s509_s8, %s24_s13  }
   0xb   : > { %p33_p5 = por %p32_p2, %p31_p0  ;;  %p570_p6 = por %p38_p4, %p37_p3 }
   0xc   : > { %p61_p7 = scmp.eq.s32.totalorder %s552_s10, 1  ;;  %p67_p8 = scmp.eq.s32.totalorder %s328_s11, 1 }
   0xd   : > { %p731_p11 = scmp.ge.s32.totalorder %s513_s9, 2 }
   0xe   : > { %p575_p9 = por %p61_p7, %p31_p0  ;;  %p579_p10 = por %p67_p8, %p37_p3 }
   0xf   : > { %83 = sbr.rel (%p731_p11) target bundleno = 58 (0x3a), region = 16 }
  0x14   : > { %86 = sbr.rel (!%p33_p5) target bundleno = 58 (0x3a), region = 20  ;;  %s87_s19 = sand.u32 (%p33_p5), 1, %s509_s8  }
  0x15   : > { %s92_s20 = smul.u32 (%p33_p5), 3, %s513_s9  ;;  %s591_s26 = scalar_lea.sflag (%p33_p5), [#allocation3], %s87_s19 }
  0x16   : > { %s346_s21 = smul.u32 (%p33_p5), 24, %s87_s19 }
  0x17   : > { %s93_s22 = ssub.s32 (%p33_p5), 5, %s92_s20 }
  0x18   : > { %p94_p12 = scmp.lt.s32.totalorder (%p33_p5), %s93_s22, 3  ;;  %s91_s27 = scalar_lea.vmem (%p33_p5), [#allocation2], %s346_s21 }
  0x1a   : > { %s749_s22 = smov (!%p94_p12, %s93_s22), 3 }
  0x1b   : > { %s331_s23 = sshll.u32 %s749_s22, 3 }
  0x1c   : > { %s97_s24 = ssub.s32 24, %s331_s23 }
  0x1d   : > { %s98_s25 = sshll.u32 %s97_s24, 4 }
  0x1e   : > { %99 = vsyncadd %s591_s26, %s98_s25  ;;  %p594_p13 = scmp.ne.s32.totalorder %s331_s23, 0  ;;  %s344_s29 = smul.u32 24, %s513_s9 }
  0x1f   : > { %s599_s30 = sshll.u32 %s91_s27, 4  ;;  %s335_s2 = sshll.u32 %s749_s22, 7  ;;  %s107_s30 = int_to_ptr.vmem [resolvable:$true] %s599_s30 }
  0x20   : > { %s102_s5 = scalar_lea.hbm %s729_s0, %s344_s29  ;;  %s399_s14 = sshrl.u32 %s335_s2, 4 }
  0x21   : > { %s104_s11 = sshll.u32 %s102_s5, 4  ;;  %s408_s23 = scalar_lea.hbm %s729_s0, 40  ;;  %s606_s11 = int_to_ptr.hbm [resolvable:$true] %s104_s11 }
  0x22   : > { %s397_s13 = sshra.s32 %s606_s11, 4  ;;  %s398_s13 = int_to_ptr.hbm [resolvable:$true] %s397_s13 }
  0x23   : > { %s404_s19 = scalar_lea.hbm %s398_s13, %s399_s14  ;;  %p409_p3 = scmp.lt.s32.totalorder %s398_s13, %s729_s0 }
  0x24   : > { %p405_p0 = scmp.ne.s32.totalorder %s398_s13, %s404_s19  ;;  %p410_p4 = scmp.lt.s32.totalorder %s408_s23, %s404_s19 }
  0x26   : > { %p406_p1 = pnand %p405_p0, %p594_p13  ;;  %p411_p5 = por %p410_p4, %p409_p3 }
  0x28   : > { %p407_p2 = pneg %p406_p1 }
  0x2a   : > { %p412_p7 = pnand %p411_p5, %p407_p2 }
  0x2c   : > { %415 = shalt.err (!%p412_p7)
}
  0x2d   : > { %s416_s27 = sshra.s32 %s107_s30, 4  ;;  %s515_s3 = smov [#allocation2]   ;;  %s417_s27 = int_to_ptr.vmem [resolvable:$true] %s416_s27 }
  0x2e   : > { %s423_s29 = scalar_lea.vmem %s417_s27, %s399_s14  ;;  %s427_s4 = scalar_lea.vmem %s515_s3, 48 }
  0x2f   : > { %p424_p8 = scmp.ne.s32.totalorder %s417_s27, %s423_s29  ;;  %p429_p1 = scmp.lt.s32.totalorder %s427_s4, %s423_s29 }
  0x31   : > { %p425_p12 = pnand %p424_p8, %p594_p13 }
  0x33   : > { %p426_p0 = pneg %p425_p12 }
  0x35   : > { %p431_p11 = pnand %p429_p1, %p426_p0 }
  0x37   : > { %434 = shalt.err (!%p431_p11)
}
  0x38   : > { %s516_s5 = smov 128   ;;  %s517_s13 = smov 8  }
  0x39   : > { %112 = dma.hbm_to_vmem [thread:$0]  (%p594_p13), %s606_s11, %s335_s2, %s107_s30, %s591_s26, %s516_s5, %s516_s5, %s517_s13  }
  0x3a PF: > { %p336_p2 = scmp.ge.s32.totalorder %s513_s9, 1  ;;  %p114_p3 = scmp.lt.s32.totalorder %s513_s9, 3 }
  0x3c   : > { %p115_p4 = pnand %p336_p2, %p114_p3 }
  0x3d   : > { %s634_s14 = sand.u32 (!%p115_p4), 1, %s505_s7  }
  0x3e   : > { %118 = sbr.rel (%p115_p4) target bundleno = 122 (0x7a), region = 24  ;;  %s121_s28 = scalar_lea.sflag (!%p115_p4), [#allocation3], %s634_s14 }
  0x3f   : > { %s347_s19 = smul.u32 (!%p115_p4), 24, %s634_s14 }
  0x41   : > { %s124_s22 = scalar_lea.vmem (!%p115_p4), [#allocation2], %s347_s19 }
  0x43   : > { %492 = dma.done.wait (%p570_p6), %s121_s28, 384  }
  0x44   : > { %494 = vsyncadd (%p570_p6), %s121_s28, 4294966912  ;;  %v154_v0 = vld [vmem:[%s124_s22] sm:$0xff]  ;;  %v155_v1 = vld [vmem:[%s124_s22 + $0x8] sm:$0xff]  ;;  %s143_s16 = scalar_lea.vmem [#allocation5], %s347_s19  ;;  %s233_s26 = scalar_lea.sflag [#allocation4], %s634_s14 }
  0x45   : > { %391 = vrcp.f32 %v154_v0  ;;  %v202_v2 = vmul.f32 %v154_v0, %v154_v0  ;;  %v211_v3 = vmul.f32 -21.0, %v154_v0  ;;  %v156_v4 = vld [vmem:[%s124_s22 + $0x10] sm:$0xff]  ;;  %v166_v5 = vand.u32 2147483647, %v154_v0  ;;  %s240_s30 = smul.u32 (%p575_p9), 3, %s552_s10 }
  0x46   : > { %393 = vrcp.f32 %v155_v1  ;;  %v168_v6 = vand.u32 2147483648, %v154_v0  ;;  %v183_v8 = vand.u32 2147483648, %v155_v1  ;;  %v203_v9 = vmul.f32 %v155_v1, %v155_v1 }
  0x47   : > { %v214_v7 = vadd.f32 48.0, %v211_v3  ;;  %v212_v10 = vmul.f32 -21.0, %v155_v1  ;;  %v205_v11 = vmul.f32 %v202_v2, %v202_v2  ;;  %395 = vrcp.f32 %v156_v4  ;;  %s241_s2 = ssub.s32 (%p575_p9), 5, %s240_s30 }
  0x48   : > { %vm162_vm0 = vweird.f32 %v154_v0  ;;  %v206_v13 = vmul.f32 %v203_v9, %v203_v9  ;;  %vm644_vm1 = vcmp.eq.f32.partialorder %v166_v5, 8.507059e+37  ;;  %vm177_vm2 = vweird.f32 %v155_v1  ;;  %p242_p6 = scmp.lt.s32.totalorder (%p575_p9), %s241_s2, 3 }
  0x49   : > { %v217_v12 = vmul.f32 %v214_v7, %v154_v0  ;;  %v215_v14 = vadd.f32 48.0, %v212_v10  ;;  %v204_v17 = vmul.f32 %v156_v4, %v156_v4  ;;  %v213_v18 = vmul.f32 -21.0, %v156_v4 }
  0x4a   : > { %v169_v21 = vor.u32 1.1754944e-38, %v168_v6  ;;  %v181_v22 = vand.u32 2147483647, %v155_v1  ;;  %v184_v23 = vor.u32 1.1754944e-38, %v183_v8  ;;  %v208_v24 = vmul.f32 %v205_v11, %v154_v0 }
  0x4b   : > { %v392_v15 = vpop.eup %391  ;;  %v220_v25 = vadd.f32 -28.0, %v217_v12  ;;  %v218_v27 = vmul.f32 %v215_v14, %v155_v1  ;;  %v209_v29 = vmul.f32 %v206_v13, %v155_v1  ;;  %v207_v30 = vmul.f32 %v204_v17, %v204_v17 }
  0x4c   : > { %v394_v19 = vpop.eup %393  ;;  %v158_v20 = vmul.f32 %v392_v15, %v154_v0  ;;  %vm163_vm3 = vweird.f32 %v392_v15  ;;  %v216_v34 = vadd.f32 48.0, %v213_v18  ;;  %vm192_vm5 = vweird.f32 %v156_v4 }
  0x4d   : > { %v173_v26 = vmul.f32 %v394_v19, %v155_v1  ;;  %v396_v31 = vpop.eup %395  ;;  %vm178_vm4 = vweird.f32 %v394_v19  ;;  %v221_v33 = vadd.f32 -28.0, %v218_v27  ;;  %v196_v37 = vand.u32 2147483647, %v156_v4  ;;  %vm649_vm6 = vmor %vm162_vm0, %vm163_vm3 }
  0x4e   : > { %v159_v28 = vsub.f32 1.0, %v158_v20  ;;  %v188_v36 = vmul.f32 %v396_v31, %v156_v4  ;;  %v223_v39 = vmul.f32 %v220_v25, %v208_v24  ;;  %v198_v41 = vand.u32 2147483648, %v156_v4  ;;  %vm654_vm7 = vmor %vm177_vm2, %vm178_vm4 }
  0x4f   : > { %v174_v32 = vsub.f32 1.0, %v173_v26  ;;  %v219_v42 = vmul.f32 %v216_v34, %v156_v4  ;;  %vm193_vm8 = vweird.f32 %v396_v31  ;;  %v210_v46 = vmul.f32 %v207_v30, %v156_v4 }
  0x50   : > { %v160_v35 = vmul.f32 %v392_v15, %v159_v28  ;;  %v189_v45 = vsub.f32 1.0, %v188_v36  ;;  %vm182_vm9 = vcmp.eq.f32.partialorder %v181_v22, 8.507059e+37  ;;  %v224_v48 = vmul.f32 %v221_v33, %v209_v29  ;;  %vm194_vm10 = vmor %vm192_vm5, %vm193_vm8 }
  0x51   : > { %v175_v40 = vmul.f32 %v394_v19, %v174_v32  ;;  %v222_v49 = vadd.f32 -28.0, %v219_v42  ;;  %vm197_vm11 = vcmp.eq.f32.partialorder %v196_v37, 8.507059e+37  ;;  %v199_v54 = vor.u32 1.1754944e-38, %v198_v41 }
  0x52   : > { %v161_v43 = vadd.f32 %v392_v15, %v160_v35  ;;  %v190_v51 = vmul.f32 %v396_v31, %v189_v45 }
  0x53   : > { %v176_v47 = vadd.f32 %v394_v19, %v175_v40  ;;  %v225_v58 = vmul.f32 %v222_v49, %v210_v46 }
  0x54   : > { %v165_v50 = vsel %vm649_vm6, %v392_v15, %v161_v43  ;;  %v191_v57 = vadd.f32 %v396_v31, %v190_v51 }
  0x55   : > { %v170_v52 = vsel %vm644_vm1, %v169_v21, %v165_v50  ;;  %v180_v53 = vsel %vm654_vm7, %v394_v19, %v176_v47 }
  0x56   : > { %v226_v55 = vadd.f32 %v223_v39, %v170_v52  ;;  %v185_v56 = vsel %vm182_vm9, %v184_v23, %v180_v53  ;;  %v195_v60 = vsel %vm194_vm10, %v396_v31, %v191_v57  ;;  %239 = sbr.rel (!%p575_p9) target bundleno = 122 (0x7a), region = 32 }
  0x57   : > { %v227_v59 = vadd.f32 %v224_v48, %v185_v56  ;;  %v200_v61 = vsel %vm197_vm11, %v199_v54, %v195_v60 }
  0x58   : > { %229 = vst [vmem:[%s143_s16] sm:$0xff] %v226_v55  ;;  %v228_v62 = vadd.f32 %v225_v58, %v200_v61 }
  0x59   : > { %230 = vst [vmem:[%s143_s16 + $0x8] sm:$0xff] %v227_v59 }
  0x5a   : > { %231 = vst [vmem:[%s143_s16 + $0x10] sm:$0xff] %v228_v62 }
  0x5b   : > { %s751_s2 = smov (!%p242_p6, %s241_s2), 3 }
  0x5c   : > { %s337_s11 = sshll.u32 %s751_s2, 3 }
  0x5d   : > { %s245_s20 = ssub.s32 24, %s337_s11 }
  0x5e   : > { %s246_s21 = sshll.u32 %s245_s20, 4 }
  0x5f   : > { %247 = vsyncadd %s233_s26, %s246_s21  ;;  %p676_p11 = scmp.ne.s32.totalorder %s337_s11, 0  ;;  %s345_s17 = smul.u32 24, %s552_s10 }
  0x60   : > { %s252_s24 = sshll.u32 %s143_s16, 4  ;;  %s341_s25 = sshll.u32 %s751_s2, 7  ;;  %s685_s24 = int_to_ptr.vmem [resolvable:$true] %s252_s24 }
  0x61   : > { %s250_s3 = scalar_lea.hbm %s730_s1, %s345_s17  ;;  %s436_s5 = sshra.s32 %s685_s24, 4  ;;  %s437_s5 = int_to_ptr.vmem [resolvable:$true] %s436_s5 }
  0x62   : > { %s254_s4 = sshll.u32 %s250_s3, 4  ;;  %s438_s13 = sshrl.u32 %s341_s25, 4  ;;  %s687_s4 = int_to_ptr.hbm [resolvable:$true] %s254_s4 }
  0x63   : > { %s443_s19 = scalar_lea.vmem %s437_s5, %s438_s13  ;;  %s518_s10 = smov [#allocation5]  }
  0x64   : > { %p444_p9 = scmp.ne.s32.totalorder %s437_s5, %s443_s19  ;;  %s447_s28 = scalar_lea.vmem %s518_s10, 48 }
  0x65   : > { %p449_p7 = scmp.lt.s32.totalorder %s447_s28, %s443_s19 }
  0x66   : > { %p445_p13 = pnand %p444_p9, %p676_p11 }
  0x68   : > { %p446_p5 = pneg %p445_p13 }
  0x6a   : > { %p451_p8 = pnand %p449_p7, %p446_p5 }
  0x6c   : > { %454 = shalt.err (!%p451_p8)
}
  0x6d   : > { %s455_s22 = sshra.s32 %s687_s4, 4  ;;  %s466_s20 = scalar_lea.hbm %s730_s1, 40  ;;  %s456_s22 = int_to_ptr.hbm [resolvable:$true] %s455_s22 }
  0x6e   : > { %s462_s16 = scalar_lea.hbm %s456_s22, %s438_s13  ;;  %p467_p2 = scmp.lt.s32.totalorder %s456_s22, %s730_s1 }
  0x6f   : > { %p463_p12 = scmp.ne.s32.totalorder %s456_s22, %s462_s16  ;;  %p468_p3 = scmp.lt.s32.totalorder %s466_s20, %s462_s16 }
  0x71   : > { %p464_p0 = pnand %p463_p12, %p676_p11  ;;  %p469_p4 = por %p468_p3, %p467_p2 }
  0x73   : > { %p465_p1 = pneg %p464_p0 }
  0x75   : > { %p470_p6 = pnand %p469_p4, %p465_p1 }
  0x77   : > { %473 = shalt.err (!%p470_p6)
}
  0x78   : > { %s519_s27 = smov 128   ;;  %s520_s29 = smov 8  }
  0x79   : > { %260 = dma.vmem_to_hbm [thread:$0]  (%p676_p11), %s685_s24, %s341_s25, %s687_s4, %s233_s26, %s519_s27, %s519_s27, %s520_s29  }
  0x7a PF: > { %s269_s3 = sand.u32 1, %s501_s6   ;;  %p743_p9 = scmp.ge.s32.totalorder %s513_s9, 2 }
  0x7b   : > { %s270_s5 = scalar_lea.sflag [#allocation4], %s269_s3 }
  0x7c   : > { %p351_p13 = pnand %p743_p9, %p579_p10 }
  0x7e   : > { %p352_p5 = pneg %p351_p13 }
  0x80   : > { %496 = dma.done.wait (%p352_p5), %s270_s5, 384  }
  0x81   : > { %498 = vsyncadd (%p352_p5), %s270_s5, 4294966912  ;;  %p14_p7 = scmp.ge.s32.totalorder %s556_s12, 4   ;;  %s744_s6 = smov %s505_s7 }
  0x82   : > { %s745_s7 = smov %s509_s8  ;;  %s746_s8 = smov %s568_s15 }
  0x83   : > { %s747_s9 = smov %s556_s12  ;;  %16 = sbr.rel (!%p14_p7) target bundleno = 5 (0x5), region = 69 }
  0x88   :  { %276 = vsyncpa [#allocation3], 1 }
  0x89   :  { %278 = vsyncpa [#allocation3 + $0x1], 1 }
  0x8a   :  { %279 = vsyncpa [#allocation4], 1 }
  0x8b   :  { %281 = vsyncpa [#allocation4 + $0x1], 1 }

</bundles_post_ra>
